<compile_context>
chip_gen: v7x
topology: tpu7x:2x2x1
jax: 0.10.0
libtpu: 0.0.40
codegen_flags: <defaults>
</compile_context>

<pallas_src>
import functools

import jax
import jax.numpy as jnp
from jax.experimental import pallas as pl
from jax.experimental.pallas import tpu as pltpu


def _round_up(x, m):
    return (x + m - 1) // m * m


def _vmem_limit_bytes():
    """~75% of the chip's VMEM, capped at 96 MiB (v5e/v6e: 128 MiB, v7x: 64 MiB)."""
    try:
        cap = int(pltpu.get_tpu_info().vmem_capacity_bytes)
        return min(cap * 3 // 4, 96 * 1024 * 1024)
    except Exception:
        return 32 * 1024 * 1024  # safe default on every generation


def _pick_l_tile(l_pad128, max_tile):
    """Largest multiple of 128 that divides l_pad128 (itself a 128-multiple) and
    is <= max_tile.  128 always qualifies, so there is no fragile full-dim
    fallback that could produce lane-sparse stores or an unbounded block."""
    m = l_pad128 // 128
    best = 1
    for d in range(1, min(m, max(1, max_tile // 128)) + 1):
        if m % d == 0:
            best = d
    return best * 128


def _conv_stats_kernel(xs_ref, wft_ref, y_ref, stats_ref, *, l_tile, l_valid,
                       mask_stats):
    """Fused depthwise+pointwise conv + partial BN stats for one (batch, L-tile).

    xs_ref   : (1, K*C_in, l_tile) bf16   stacked shifted input rows (L on lanes)
    wft_ref  : (C_out, K*C_in)     bf16   fused (depthwise*pointwise)^T weight
    y_ref    : (1, C_out, l_tile)  bf16   conv output tile (lane-dense store)
    stats_ref: (1, 1, C_out, 2)    f32    col0 = tile sum, col1 = tile sum-of-squares
    """
    # Single MXU pass: contraction over K*C_in, output (C_out, l_tile).
    y = jnp.dot(wft_ref[...], xs_ref[0], preferred_element_type=jnp.float32)
    y_ref[0] = y.astype(y_ref.dtype)

    # Per-tile BatchNorm partials (sum / sum-of-squares over the valid L columns).
    if mask_stats:  # static: only when L was padded up to a 128 multiple
        start = pl.program_id(1) * l_tile
        lane = jax.lax.broadcasted_iota(jnp.int32, (1, l_tile), 1)
        y = jnp.where(lane < (l_valid - start), y, 0.0)
    stats_ref[0, 0, :, 0:1] = jnp.sum(y, axis=1, keepdims=True)
    stats_ref[0, 0, :, 1:2] = jnp.sum(y * y, axis=1, keepdims=True)


def _bn_relu_kernel(y_ref, scale_ref, shift_ref, o_ref):
    """BN affine + ReLU; L stays on lanes, so no transpose and lane-dense stores."""
    y = y_ref[0].astype(jnp.float32)                       # (C_out, l_tile)
    o_ref[0] = jnp.maximum(y * scale_ref[...] + shift_ref[...], 0.0).astype(o_ref.dtype)


def depthwise_separable_conv(x_ncl, wd, wp, gamma, beta, *, padding, eps=1e-5):
    """x_ncl: (N, C_in, L); wd: (C_in, K) depthwise weight (PyTorch (C_in,1,K) squeezed);
    wp: (C_out, C_in) pointwise weight (PyTorch (C_out,C_in,1) squeezed).
    Returns (N, C_out, L_out) with training-mode BatchNorm + ReLU."""
    n, c_in, l = x_ncl.shape
    c_out, k = wp.shape[0], wd.shape[1]
    l_out = l + 2 * padding - k + 1
    assert l_out > 0
    l_out_pad = _round_up(l_out, 128)            # 128-aligned intermediate L axis
    l_x = l_out_pad + k - 1                      # padded input length the stack reads

    # Input stays channels-on-sublanes / L-on-lanes: no transpose anywhere.
    # bf16 cast + conv padding + the K shifted copies fuse into one XLA pass.
    # TODO(synk): an in-kernel halo read of the raw x would avoid duplicating the
    # input K times in HBM for large K (not worth it for the small K used here).
    xp = jnp.pad(x_ncl.astype(jnp.bfloat16),
                 ((0, 0), (0, 0), (padding, l_x - l - padding)))
    xs = jnp.concatenate([xp[:, :, kk:kk + l_out_pad] for kk in range(k)], axis=1)
    # xs[n, kk*C_in + ci, p] = x_padded[n, ci, p + kk];  shape (N, K*C_in, l_out_pad)

    # Fused, pre-transposed weight: wft[co, kk*C_in + ci] = wd[ci, kk] * wp[co, ci].
    wft = (wd.astype(jnp.float32).T[None, :, :] *
           wp.astype(jnp.float32)[:, None, :]).reshape(c_out, k * c_in)
    wft = wft.astype(jnp.bfloat16)

    vmem_limit = _vmem_limit_bytes()
    # L-tile caps from a conservative VMEM budget (2x extra headroom on top of the
    # explicit double-buffer factor), always at least 128, at most 2048.
    k1_bytes_per_l = 2 * 2 * (k * c_in + c_out)            # double-buffered bf16 in+out
    k2_bytes_per_l = 2 * (2 * c_out + 4 * c_out)           # bf16 in + f32 out
    l_tile1 = _pick_l_tile(l_out_pad, min(2048, vmem_limit // (2 * k1_bytes_per_l)))
    l_tile2 = _pick_l_tile(l_out_pad, min(2048, vmem_limit // (2 * k2_bytes_per_l)))
    n_lt1 = l_out_pad // l_tile1
    n_lt2 = l_out_pad // l_tile2

    y, stats = pl.pallas_call(
        functools.partial(_conv_stats_kernel, l_tile=l_tile1, l_valid=l_out,
                          mask_stats=(l_out != l_out_pad)),
        out_shape=(
            jax.ShapeDtypeStruct((n, c_out, l_out_pad), jnp.bfloat16),
            jax.ShapeDtypeStruct((n, n_lt1, c_out, 2), jnp.float32),
        ),
        grid_spec=pltpu.PrefetchScalarGridSpec(
            num_scalar_prefetch=0,
            grid=(n, n_lt1),
            in_specs=[
                pl.BlockSpec((1, k * c_in, l_tile1), lambda i, j: (i, 0, j)),
                pl.BlockSpec((c_out, k * c_in), lambda i, j: (0, 0)),
            ],
            out_specs=[
                pl.BlockSpec((1, c_out, l_tile1), lambda i, j: (i, 0, j)),
                pl.BlockSpec((1, 1, c_out, 2), lambda i, j: (i, j, 0, 0)),
            ],
        ),
        compiler_params=pltpu.CompilerParams(
            dimension_semantics=("parallel", "parallel"),
            vmem_limit_bytes=vmem_limit),
    )(xs, wft)

    # Combine per-tile (sum, sumsq) with Chan's parallel-variance formula (f32).
    counts = jnp.asarray([min(l_tile1, l_out - j * l_tile1) for j in range(n_lt1)],
                         jnp.float32)[None, :, None]        # (1, n_lt1, 1), all >= 1
    s, ss = stats[..., 0], stats[..., 1]                    # (N, n_lt1, C_out)
    total = jnp.float32(n * l_out)
    mean = jnp.sum(s, axis=(0, 1)) / total                  # (C_out,)
    tile_mean = s / counts
    m2 = (jnp.sum(ss - s * tile_mean, axis=(0, 1)) +
          jnp.sum(counts * (tile_mean - mean[None, None, :]) ** 2, axis=(0, 1)))
    var = jnp.maximum(m2 / total, 0.0)                      # biased var (BN training)
    scale = gamma.astype(jnp.float32) / jnp.sqrt(var + eps)
    shift = beta.astype(jnp.float32) - mean * scale
    # TODO(synk): BatchNorm running_mean/running_var buffer updates (training side
    # effect) are not produced; they do not affect the forward output.
    # Note: stats come from the f32 accumulator while kernel 2 normalizes the
    # bf16-rounded y; the mismatch is bounded by bf16 rounding (covered by tol).

    out_pad = pl.pallas_call(
        _bn_relu_kernel,
        out_shape=jax.ShapeDtypeStruct((n, c_out, l_out_pad), x_ncl.dtype),
        grid_spec=pltpu.PrefetchScalarGridSpec(
            num_scalar_prefetch=0,
            grid=(n, n_lt2),
            in_specs=[
                pl.BlockSpec((1, c_out, l_tile2), lambda i, j: (i, 0, j)),
                pl.BlockSpec((c_out, 1), lambda i, j: (0, 0)),
                pl.BlockSpec((c_out, 1), lambda i, j: (0, 0)),
            ],
            out_specs=pl.BlockSpec((1, c_out, l_tile2), lambda i, j: (i, 0, j)),
        ),
        compiler_params=pltpu.CompilerParams(
            dimension_semantics=("parallel", "parallel"),
            vmem_limit_bytes=vmem_limit),
    )(y, scale[:, None], shift[:, None])

    return out_pad if l_out == l_out_pad else out_pad[:, :, :l_out]


def _reference(x, wd, wp, gamma, beta, padding, eps=1e-5):
    """Pure-JAX f32 replica of the PyTorch forward (training-mode BN)."""
    xp = jnp.pad(x, ((0, 0), (0, 0), (padding, padding)))
    k = wd.shape[1]
    l_out = xp.shape[2] - k + 1
    dw = jnp.zeros((x.shape[0], x.shape[1], l_out), jnp.float32)
    for kk in range(k):
        dw = dw + xp[:, :, kk:kk + l_out] * wd[:, kk][None, :, None]
    y = jnp.einsum("ncl,oc->nol", dw, wp)
    mean = y.mean(axis=(0, 2), keepdims=True)
    var = y.var(axis=(0, 2), keepdims=True)                 # biased, like BN training
    yn = (y - mean) / jnp.sqrt(var + eps) * gamma[None, :, None] + beta[None, :, None]
    return jnp.maximum(yn, 0.0)


if __name__ == "__main__":
    N, C_IN, C_OUT, L, K, PAD = 2, 4, 8, 16, 3, 1

    key = jax.random.PRNGKey(0)
    kx, kd, kp, kg, kb = jax.random.split(key, 5)
    x = jax.random.normal(kx, (N, C_IN, L), jnp.float32)
    # PyTorch-shaped weights, squeezed: depthwise (C_in,1,K)->(C_in,K),
    # pointwise (C_out,C_in,1)->(C_out,C_in).
    wd = jax.random.normal(kd, (C_IN, K), jnp.float32) * 0.5
    wp = jax.random.normal(kp, (C_OUT, C_IN), jnp.float32) * 0.5
    gamma = 1.0 + 0.2 * jax.random.normal(kg, (C_OUT,), jnp.float32)
    beta = 0.2 * jax.random.normal(kb, (C_OUT,), jnp.float32)

    fn = jax.jit(functools.partial(depthwise_separable_conv, padding=PAD))
    out = jax.block_until_ready(fn(x, wd, wp, gamma, beta))

    ref = _reference(x, wd, wp, gamma, beta, PAD)
    assert out.shape == (N, C_OUT, L)
    err = float(jnp.max(jnp.abs(out - ref)))
    # bf16 MXU inputs + bf16 intermediate vs. an all-f32 reference -> loosened tolerance.
    assert jnp.allclose(out, ref, rtol=5e-2, atol=5e-2), f"max abs err {err}"
    print("KERNEL_OK")
</pallas_src>

<mosaic_0001>
module attributes {stable_mosaic.version = 11 : i64} {
  func.func @_conv_stats_kernel(%arg0: i32, %arg1: i32, %arg2: memref<1x12x128xbf16, #tpu.memory_space<vmem>>, %arg3: memref<8x12xbf16, #tpu.memory_space<vmem>>, %arg4: memref<1x8x128xbf16, #tpu.memory_space<vmem>>, %arg5: memref<1x1x8x2xf32, #tpu.memory_space<vmem>>) attributes {dimension_semantics = [#tpu.dimension_semantics<parallel>, #tpu.dimension_semantics<parallel>], iteration_bounds = array<i64: 2, 1>, scalar_prefetch = 0 : i64, scratch_operands = 0 : i64, tpu.core_type = #tpu.core_type<tc>, window_params = [{transform_indices = @transform_0, window_bounds = array<i64: 1, 12, 128>}, {pipeline_mode = #tpu.pipeline_mode<synchronous>, transform_indices = @transform_1, window_bounds = array<i64: 8, 12>}, {transform_indices = @transform_2, window_bounds = array<i64: 1, 8, 128>}, {transform_indices = @transform_3, window_bounds = array<i64: 1, 1, 8, 2>}]} {
    %c0 = arith.constant 0 : index
    %c0_0 = arith.constant 0 : index
    %0 = vector.load %arg3[%c0, %c0_0] : memref<8x12xbf16, #tpu.memory_space<vmem>>, vector<8x12xbf16>
    %c0_1 = arith.constant 0 : index
    %c0_2 = arith.constant 0 : index
    %c0_3 = arith.constant 0 : index
    %1 = vector.load %arg2[%c0_1, %c0_2, %c0_3] : memref<1x12x128xbf16, #tpu.memory_space<vmem>>, vector<1x12x128xbf16>
    %2 = vector.shape_cast %1 : vector<1x12x128xbf16> to vector<12x128xbf16>
    %cst = arith.constant dense<0.000000e+00> : vector<8x128xf32>
    %3 = tpu.matmul %0, %2, %cst {dimension_numbers = #tpu.dot_dimension_numbers<[1], [0], [0], [1], [0, 0, 1, 1], [], []>} : vector<8x12xbf16>, vector<12x128xbf16>, vector<8x128xf32> -> vector<8x128xf32>
    %4 = arith.truncf %3 : vector<8x128xf32> to vector<8x128xbf16>
    %c0_4 = arith.constant 0 : index
    %c0_5 = arith.constant 0 : index
    %c0_6 = arith.constant 0 : index
    %5 = vector.load %arg4[%c0_4, %c0_5, %c0_6] : memref<1x8x128xbf16, #tpu.memory_space<vmem>>, vector<1x8x128xbf16>
    %6 = vector.shape_cast %5 : vector<1x8x128xbf16> to vector<8x128xbf16>
    %7 = vector.shape_cast %4 : vector<8x128xbf16> to vector<1x8x128xbf16>
    tpu.vector_store %arg4[%c0_4, %c0_5, %c0_6], %7 {strides = array<i32>} : memref<1x8x128xbf16, #tpu.memory_space<vmem>>, vector<1x8x128xbf16>,
    %c128_i32 = arith.constant 128 : i32
    %8 = arith.muli %arg1, %c128_i32 : i32
    %9 = tpu.iota {dimensions = array<i32: 1>} : vector<1x128xi32>
    %c16_i32 = arith.constant 16 : i32
    %10 = arith.subi %c16_i32, %8 : i32
    %11 = vector.broadcast %10 : i32 to vector<1x128xi32>
    %12 = arith.cmpi slt, %9, %11 : vector<1x128xi32>
    %cst_7 = arith.constant 0.000000e+00 : f32
    %13 = vector.shape_cast %12 : vector<1x128xi1> to vector<1x128xi1>
    %14 = vector.broadcast %13 : vector<1x128xi1> to vector<8x128xi1>
    %15 = vector.broadcast %cst_7 : f32 to vector<8x128xf32>
    %16 = arith.select %14, %3, %15 : vector<8x128xi1>, vector<8x128xf32>
    %cst_8 = arith.constant dense<0.000000e+00> : vector<8xf32>
    %17 = vector.multi_reduction <add>, %16, %cst_8 [1] : vector<8x128xf32> to vector<8xf32>
    %18 = vector.shape_cast %17 : vector<8xf32> to vector<8x1xf32>
    %c0_9 = arith.constant 0 : index
    %c0_10 = arith.constant 0 : index
    %c0_11 = arith.constant 0 : index
    %c0_12 = arith.constant 0 : index
    %19 = vector.load %arg5[%c0_9, %c0_10, %c0_11, %c0_12] : memref<1x1x8x2xf32, #tpu.memory_space<vmem>>, vector<1x1x8x1xf32>
    %20 = vector.shape_cast %19 : vector<1x1x8x1xf32> to vector<8x1xf32>
    %21 = vector.shape_cast %18 : vector<8x1xf32> to vector<1x1x8x1xf32>
    tpu.vector_store %arg5[%c0_9, %c0_10, %c0_11, %c0_12], %21 {strides = array<i32>} : memref<1x1x8x2xf32, #tpu.memory_space<vmem>>, vector<1x1x8x1xf32>,
    %22 = arith.mulf %16, %16 : vector<8x128xf32>
    %cst_13 = arith.constant dense<0.000000e+00> : vector<8xf32>
    %23 = vector.multi_reduction <add>, %22, %cst_13 [1] : vector<8x128xf32> to vector<8xf32>
    %24 = vector.shape_cast %23 : vector<8xf32> to vector<8x1xf32>
    %c0_14 = arith.constant 0 : index
    %c0_15 = arith.constant 0 : index
    %c0_16 = arith.constant 0 : index
    %c1 = arith.constant 1 : index
    %25 = vector.load %arg5[%c0_14, %c0_15, %c0_16, %c1] : memref<1x1x8x2xf32, #tpu.memory_space<vmem>>, vector<1x1x8x1xf32>
    %26 = vector.shape_cast %25 : vector<1x1x8x1xf32> to vector<8x1xf32>
    %27 = vector.shape_cast %24 : vector<8x1xf32> to vector<1x1x8x1xf32>
    tpu.vector_store %arg5[%c0_14, %c0_15, %c0_16, %c1], %27 {strides = array<i32>} : memref<1x1x8x2xf32, #tpu.memory_space<vmem>>, vector<1x1x8x1xf32>,
    return
  }
  func.func @transform_0(%arg0: i32, %arg1: i32) -> (i32, i32, i32) {
    %c0_i32 = arith.constant 0 : i32
    %c0_i32_0 = arith.constant 0 : i32
    return %arg0, %c0_i32, %arg1 : i32, i32, i32
  }
  func.func @transform_1(%arg0: i32, %arg1: i32) -> (i32, i32) {
    %c0_i32 = arith.constant 0 : i32
    %c0_i32_0 = arith.constant 0 : i32
    %c0_i32_1 = arith.constant 0 : i32
    return %c0_i32, %c0_i32_0 : i32, i32
  }
  func.func @transform_2(%arg0: i32, %arg1: i32) -> (i32, i32, i32) {
    %c0_i32 = arith.constant 0 : i32
    %c0_i32_0 = arith.constant 0 : i32
    return %arg0, %c0_i32, %arg1 : i32, i32, i32
  }
  func.func @transform_3(%arg0: i32, %arg1: i32) -> (i32, i32, i32, i32) {
    %c0_i32 = arith.constant 0 : i32
    %c0_i32_0 = arith.constant 0 : i32
    %c0_i32_1 = arith.constant 0 : i32
    return %arg0, %arg1, %c0_i32, %c0_i32_0 : i32, i32, i32, i32
  }
}

module attributes {stable_mosaic.version = 11 : i64} {
  func.func @_bn_relu_kernel(%arg0: i32, %arg1: i32, %arg2: memref<1x8x128xbf16, #tpu.memory_space<vmem>>, %arg3: memref<8x1xf32, #tpu.memory_space<vmem>>, %arg4: memref<8x1xf32, #tpu.memory_space<vmem>>, %arg5: memref<1x8x128xf32, #tpu.memory_space<vmem>>) attributes {dimension_semantics = [#tpu.dimension_semantics<parallel>, #tpu.dimension_semantics<parallel>], iteration_bounds = array<i64: 2, 1>, scalar_prefetch = 0 : i64, scratch_operands = 0 : i64, tpu.core_type = #tpu.core_type<tc>, window_params = [{transform_indices = @transform_0, window_bounds = array<i64: 1, 8, 128>}, {pipeline_mode = #tpu.pipeline_mode<synchronous>, transform_indices = @transform_1, window_bounds = array<i64: 8, 1>}, {pipeline_mode = #tpu.pipeline_mode<synchronous>, transform_indices = @transform_2, window_bounds = array<i64: 8, 1>}, {transform_indices = @transform_3, window_bounds = array<i64: 1, 8, 128>}]} {
    %c0 = arith.constant 0 : index
    %c0_0 = arith.constant 0 : index
    %c0_1 = arith.constant 0 : index
    %0 = vector.load %arg2[%c0, %c0_0, %c0_1] : memref<1x8x128xbf16, #tpu.memory_space<vmem>>, vector<1x8x128xbf16>
    %1 = vector.shape_cast %0 : vector<1x8x128xbf16> to vector<8x128xbf16>
    %2 = arith.extf %1 : vector<8x128xbf16> to vector<8x128xf32>
    %c0_2 = arith.constant 0 : index
    %c0_3 = arith.constant 0 : index
    %3 = vector.load %arg3[%c0_2, %c0_3] : memref<8x1xf32, #tpu.memory_space<vmem>>, vector<8x1xf32>
    %4 = vector.broadcast %3 : vector<8x1xf32> to vector<8x128xf32>
    %5 = arith.mulf %2, %4 : vector<8x128xf32>
    %c0_4 = arith.constant 0 : index
    %c0_5 = arith.constant 0 : index
    %6 = vector.load %arg4[%c0_4, %c0_5] : memref<8x1xf32, #tpu.memory_space<vmem>>, vector<8x1xf32>
    %7 = vector.broadcast %6 : vector<8x1xf32> to vector<8x128xf32>
    %8 = arith.addf %5, %7 : vector<8x128xf32>
    %cst = arith.constant 0.000000e+00 : f32
    %9 = vector.broadcast %cst : f32 to vector<8x128xf32>
    %10 = arith.maximumf %8, %9 : vector<8x128xf32>
    %c0_6 = arith.constant 0 : index
    %c0_7 = arith.constant 0 : index
    %c0_8 = arith.constant 0 : index
    %11 = vector.load %arg5[%c0_6, %c0_7, %c0_8] : memref<1x8x128xf32, #tpu.memory_space<vmem>>, vector<1x8x128xf32>
    %12 = vector.shape_cast %11 : vector<1x8x128xf32> to vector<8x128xf32>
    %13 = vector.shape_cast %10 : vector<8x128xf32> to vector<1x8x128xf32>
    tpu.vector_store %arg5[%c0_6, %c0_7, %c0_8], %13 {strides = array<i32>} : memref<1x8x128xf32, #tpu.memory_space<vmem>>, vector<1x8x128xf32>,
    return
  }
  func.func @transform_0(%arg0: i32, %arg1: i32) -> (i32, i32, i32) {
    %c0_i32 = arith.constant 0 : i32
    %c0_i32_0 = arith.constant 0 : i32
    return %arg0, %c0_i32, %arg1 : i32, i32, i32
  }
  func.func @transform_1(%arg0: i32, %arg1: i32) -> (i32, i32) {
    %c0_i32 = arith.constant 0 : i32
    %c0_i32_0 = arith.constant 0 : i32
    %c0_i32_1 = arith.constant 0 : i32
    return %c0_i32, %c0_i32_0 : i32, i32
  }
  func.func @transform_2(%arg0: i32, %arg1: i32) -> (i32, i32) {
    %c0_i32 = arith.constant 0 : i32
    %c0_i32_0 = arith.constant 0 : i32
    %c0_i32_1 = arith.constant 0 : i32
    return %c0_i32, %c0_i32_0 : i32, i32
  }
  func.func @transform_3(%arg0: i32, %arg1: i32) -> (i32, i32, i32) {
    %c0_i32 = arith.constant 0 : i32
    %c0_i32_0 = arith.constant 0 : i32
    return %arg0, %c0_i32, %arg1 : i32, i32, i32
  }
}

</mosaic_0001>

<bundles_post_ra>
// kernel: depthwise_separable_conv.2
= control target key start
LH: loop header
LB: loop body
LE: loop exit
PB: predicated region body
PF: predicated region fallthrough
CT: control target
= control target key end

     0   :  { %s509_s12 = smov 0   ;;  %s511_s13 = smov 0   ;;  %s548_s0 = inlined_call_operand.vmem [shape: bf16[2,12,128], index: 0, kind: input, shape index: {}]   ;;  %s549_s1 = inlined_call_operand.vmem [shape: bf16[8,12], index: 1, kind: input, shape index: {}]   ;;  %s550_s2 = inlined_call_operand.vmem [shape: bf16[2,8,128], index: 2, kind: output, shape index: {0}]   ;;  %s551_s3 = inlined_call_operand.vmem [shape: f32[2,1,8,2], index: 3, kind: output, shape index: {1}]  }
   0x1   :  { %s513_s14 = smov 0  }
   0x2 LB: > { %s26_s15 = sadd.s32 1, %s481_s13  ;;  %p418_p0 = scmp.ge.s32.totalorder %s485_s14, 1  ;;  %s485_s14 = sphi %s513_s14, %s14_s14   ;;  %s481_s13 = sphi %s511_s13, %s553_s13   ;;  %s477_s12 = sphi %s509_s12, %s552_s12  }
   0x3   : > { %p28_p1 = scmp.ge.s32.totalorder %s26_s15, 2  ;;  %p161_p2 = scmp.lt.s32.totalorder %s485_s14, 3 }
   0x5   : > { %s555_s15 = smov (%p28_p1, %s26_s15), 0  ;;  %p162_p3 = pnand %p418_p0, %p161_p2 }
   0x6   : > { %p197_p4 = scmp.lt.s32.totalorder (!%p162_p3), %s477_s12, 1  ;;  %v487_v0 = vmov (!%p162_p3), 0.0   ;;  %vm488_vm0 = vmmov (!%p162_p3), 0   ;;  %vm232_vm1 = vcmask (!%p162_p3), 1045504   ;;  %v220_v3 = vld [vmem:[%s549_s1] sm:$0xf] (!%p162_p3)  ;;  %v279_v4 = vlaneseq (!%p162_p3) }
   0x7   : > { %165 = sbr.rel (%p162_p3) target bundleno = 382 (0x17e), region = 28  ;;  %430 = vmatprep.subr.bf16.mxu0 (!%p162_p3), %v487_v0  ;;  %432 = vmatprep.mubr.msk.bf16.mxu0 (!%p162_p3), %vm488_vm0, %v487_v0  ;;  %vm228_vm2 = vcmask (!%p162_p3), 97280   ;;  %vm289_vm4 = vcmask (!%p162_p3), 7168   ;;  %vm294_vm5 = vcmask (!%p162_p3), 15368  }
   0x8   : > { %v280_v5 = vand.u32 (!%p162_p3), 127, %v279_v4 }
   0xa   : > { %vm283_vm3 = vcmp.lt.s32.totalorder (!%p162_p3), %v280_v5, 16 }
   0xe   : > { %s557_s12 = smov (!%p197_p4, %s477_s12), 1 }
   0xf   : > { %s427_s16 = sshll.u32 %s557_s12, 3  ;;  %s421_s22 = sshll.u32 %s557_s12, 2 }
  0x10   : > { %s204_s19 = scalar_lea.vmem %s548_s0, %s427_s16  ;;  %s211_s25 = scalar_lea.vmem %s550_s2, %s421_s22 }
  0x11   : > { %v462_v1 = vld [vmem:[%s204_s19] sm:$0x3f]   ;;  %s218_s28 = scalar_lea.vmem %s551_s3, %s427_s16 }
  0x12   : > { %v234_v2 = vsel %vm232_vm1, %v462_v1, 0 }
  0x13   : > { %431 = vmatpush3.bf16.msra.mxu0 %v234_v2 }
  0x16   : > { %433 = vmatmul.mubr.msk.bf16.vlgmr.msra.gmra.mrb[0].mxu0 %vm228_vm2, %v220_v3 }
  0xe9   : > { %v270_v6 = vpop.f32.mrb[0].mxu0 }
  0xea   : > { %v276_v7 = vpack.c.bf16 %v270_v6, %v270_v6  ;;  %v434_v8 = vpop.f32.mrb[1].mxu0  ;;  %v286_v9 = vsel %vm283_vm3, %v270_v6, 0.0 }
  0xeb   : > { %287 = vadd.xlane.f32.xlu0 %v286_v9  ;;  %v273_v10 = vpop.f32.mrb[2].mxu0  ;;  %v291_v12 = vmul.f32 %v286_v9, %v286_v9 }
  0xec   : > { %277 = vst [vmem:[%s211_s25] sm:$0xf] %v276_v7  ;;  %v435_v11 = vpop.f32.mrb[3].mxu0 }
  0xef   : > { %292 = vadd.xlane.f32.xlu0 %v291_v12 }
 0x178   : > { %v288_v13 = vpop.xlane.xlu0 %287 }
 0x179   : > { %290 = vst.msk [vmem:[%s218_s28] sm:$0xff] %vm289_vm4, %v288_v13 }
 0x17c   : > { %v293_v14 = vpop.xlane.xlu0 %292 }
 0x17d   : > { %295 = vst.msk [vmem:[%s218_s28] sm:$0xff] %vm294_vm5, %v293_v14 }
 0x17e PF: > { %s14_s14 = sadd.s32 1, %s485_s14   ;;  %s552_s12 = smov %s481_s13 }
 0x17f   : > { %p11_p5 = scmp.ge.s32.totalorder %s14_s14, 4   ;;  %s553_s13 = smov %s555_s15 }
 0x181   :  { %13 = sbr.rel (!%p11_p5) target bundleno = 2 (0x2), region = 70 }

// kernel: depthwise_separable_conv.3
= control target key start
LH: loop header
LB: loop body
LE: loop exit
PB: predicated region body
PF: predicated region fallthrough
CT: control target
= control target key end

     0   :  { %8 = vsyncpa [#allocation3], 0  ;;  %s583_s0 = inlined_call_operand.vmem [shape: bf16[2,8,128], index: 0, kind: input, shape index: {}]   ;;  %s584_s1 = inlined_call_operand.vmem [shape: f32[8,1], index: 1, kind: input, shape index: {}]   ;;  %s585_s2 = inlined_call_operand.vmem [shape: f32[8,1], index: 2, kind: input, shape index: {}]   ;;  %s586_s3 = inlined_call_operand.hbm [shape: f32[2,8,128], index: 3, kind: output, shape index: {}]  }
   0x1   :  { %10 = vsyncpa [#allocation3 + $0x1], 0  ;;  %s465_s12 = smov 0   ;;  %s467_s13 = smov 0  }
   0x2   :  { %s469_s14 = smov 0   ;;  %s471_s15 = smov 0  }
   0x3   :  { %s473_s16 = smov 0   ;;  %s475_s17 = smov 0  }
   0x4 LB: > { %s295_s18 = sadd.s32 4294967295, %s441_s17   ;;  %s296_s19 = sadd.s32 4294967294, %s441_s17   ;;  %s441_s17 = sphi %s475_s17, %s16_s17   ;;  %s437_s16 = sphi %s473_s16, %s593_s16   ;;  %s433_s15 = sphi %s471_s15, %s592_s15   ;;  %s429_s14 = sphi %s469_s14, %s591_s14   ;;  %s425_s13 = sphi %s467_s13, %s590_s13   ;;  %s421_s12 = sphi %s465_s12, %s589_s12  }
   0x5   : > { %s28_s20 = sadd.s32 1, %s437_s16  ;;  %s107_s21 = sadd.s32 1, %s429_s14 }
   0x6   : > { %p30_p0 = scmp.ge.s32.totalorder %s28_s20, 2  ;;  %p117_p1 = scmp.ne.s32.totalorder %s429_s14, %s425_s13 }
   0x7   : > { %p118_p2 = scmp.eq.s32.totalorder %s295_s18, 1  ;;  %p123_p3 = scmp.ne.s32.totalorder %s425_s13, %s421_s12 }
   0x8   : > { %s595_s20 = smov (%p30_p0, %s28_s20), 0  ;;  %p124_p5 = scmp.eq.s32.totalorder %s296_s19, 1 }
   0x9   : > { %p505_p4 = por %p118_p2, %p117_p1  ;;  %s102_s23 = ssub.s32 %s437_s16, %s595_s20 }
   0xa   : > { %p299_p6 = scmp.ge.s32.totalorder %s441_s17, 1  ;;  %p105_p7 = scmp.eq.s32.totalorder %s102_s23, 0 }
   0xb   : > { %p512_p8 = por %p124_p5, %p123_p3  ;;  %p158_p9 = scmp.lt.s32.totalorder %s441_s17, 3 }
   0xc   : > { %s518_s25 = scalar_select %p105_p7, %s429_s14, %s107_s21  }
   0xd   : > { %p159_p10 = pnand %p299_p6, %p158_p9 }
   0xe   : > { %v193_v0 = vld [vmem:[%s584_s1] sm:$0xff] (!%p159_p10)  ;;  %v443_v1 = vmov (!%p159_p10), 0   ;;  %p184_p11 = scmp.lt.s32.totalorder (!%p159_p10), %s433_s15, 1  ;;  %s181_s8 = sand.u32 (!%p159_p10), 1, %s425_s13  }
   0xf   : > { %162 = sbr.rel (%p159_p10) target bundleno = 166 (0xa6), region = 32  ;;  %362 = vset.pattern.permute.xlu0 (!%p159_p10), %v443_v1  ;;  %v200_v2 = vld [vmem:[%s585_s2] sm:$0xff] (!%p159_p10)  ;;  %s300_s9 = sshll.u32 (!%p159_p10), %s181_s8, 3 }
  0x10   : > { %196 = vperm.xlu0 (!%p159_p10), %362, %v193_v0   ;;  %s303_s10 = sshll.u32 (!%p159_p10), %s433_s15, 7  ;;  %s183_s11 = scalar_lea.vmem (!%p159_p10), [#allocation2], %s300_s9 }
  0x11   : > { %s224_s18 = sshll.u32 (!%p159_p10), %s183_s11, 4  ;;  %s536_s23 = scalar_lea.hbm (!%p159_p10), %s586_s3, %s303_s10  ;;  %s538_s18 = int_to_ptr.vmem [resolvable:$true] %s224_s18 }
  0x12   : > { %s210_s26 = scalar_lea.sflag (!%p159_p10), [#allocation3], %s181_s8  ;;  %s363_s27 = scalar_lea.vmem (!%p159_p10), %s538_s18, 128 }
  0x13   : > { %p364_p12 = scmp.ne.s32.totalorder (!%p159_p10), %s538_s18, %s363_s27 }
  0x14   : > { %203 = vperm.xlu0 (!%p159_p10), %362, %v200_v2  }
  0x15   : > { %p365_p13 = pnand (!%p159_p10), %p364_p12, %p505_p4 }
  0x16   : > { %s185_s30 = scalar_select %p184_p11, %s433_s15, 1 }
  0x17   : > { %p366_p0 = pneg %p365_p13  ;;  %s444_s15 = smov [#allocation2]  }
  0x18   : > { %s301_s4 = sshll.u32 %s185_s30, 2  ;;  %s367_s28 = sshll.u32 %s444_s15, 4  ;;  %s368_s28 = int_to_ptr.vmem [resolvable:$false] %s367_s28 }
  0x19   : > { %s190_s7 = scalar_lea.vmem %s583_s0, %s301_s4  ;;  %s369_s29 = scalar_lea.vmem %s368_s28, 256 }
  0x1a   : > { %v191_v3 = vld [vmem:[%s190_s7] sm:$0xf]  ;;  %p370_p1 = scmp.lt.s32.totalorder %s538_s18, %s368_s28  ;;  %p371_p2 = scmp.lt.s32.totalorder %s369_s29, %s363_s27 }
  0x1b   : > { %v192_v4 = vunpack.c.l.bf16 %v191_v3 }
  0x1c   : > { %p372_p3 = por %p371_p2, %p370_p1 }
  0x1e   : > { %p373_p5 = pnand %p372_p3, %p366_p0 }
  0x8f   : > { %v197_v5 = vpop.permute.xlu0 %196 }
  0x90   : > { %v199_v6 = vmul.f32 %v197_v5, %v192_v4 }
  0x93   : > { %v204_v7 = vpop.permute.xlu0 %203 }
  0x94   : > { %v206_v8 = vadd.f32 %v204_v7, %v199_v6 }
  0x96   : > { %v207_v9 = vmax.f32 %v206_v8, 0.0 }
  0x98   : > { %208 = vst [vmem:[%s183_s11] sm:$0xff] %v207_v9 }
  0x99   : > { %376 = shalt.err (!%p373_p5)
}
  0x9a   : > { %s377_s30 = scalar_lea.hbm %s536_s23, 128  ;;  %s381_s6 = scalar_lea.hbm %s586_s3, 256 }
  0x9b   : > { %p378_p6 = scmp.ne.s32.totalorder %s536_s23, %s377_s30  ;;  %p382_p10 = scmp.lt.u32.totalorder %s536_s23, %s586_s3 }
  0x9c   : > { %p383_p11 = scmp.lt.u32.totalorder %s381_s6, %s377_s30  ;;  %p385_p13 = scmp.lt.u32.totalorder %s377_s30, %s536_s23 }
  0x9d   : > { %p379_p7 = pnand %p378_p6, %p505_p4 }
  0x9e   : > { %p384_p12 = por %p383_p11, %p382_p10 }
  0x9f   : > { %p380_p9 = pneg %p379_p7 }
  0xa0   : > { %p386_p0 = por %p385_p13, %p384_p12 }
  0xa2   : > { %p387_p1 = pnand %p386_p0, %p380_p9 }
  0xa4   : > { %390 = shalt.err (!%p387_p1)
}
  0xa5   : > { %306 = dma.vmem_to_hbm [thread:$0]  (%p505_p4), %s538_s18, 128, %s536_s23, %s210_s26  }
  0xa6 PF: > { %p312_p2 = scmp.ge.s32.totalorder %s441_s17, 2  ;;  %s236_s9 = sand.u32 1, %s421_s12  }
  0xa7   : > { %s237_s10 = scalar_lea.sflag [#allocation3], %s236_s9 }
  0xa8   : > { %p309_p3 = pnand %p312_p2, %p512_p8 }
  0xaa   : > { %416 = dma.done.wait (!%p309_p3), %s237_s10, 128  }
  0xab   : > { %418 = vsyncadd (!%p309_p3), %s237_s10, 4294967168  ;;  %s16_s17 = sadd.s32 1, %s441_s17   ;;  %s589_s12 = smov %s425_s13 }
  0xac   : > { %p13_p5 = scmp.ge.s32.totalorder %s16_s17, 4   ;;  %s590_s13 = smov %s429_s14 }
  0xad   : > { %s591_s14 = smov %s518_s25  ;;  %s592_s15 = smov %s437_s16 }
  0xae   : > { %s593_s16 = smov %s595_s20  ;;  %15 = sbr.rel (!%p13_p5) target bundleno = 4 (0x4), region = 67 }
  0xb5   :  { %242 = vsyncpa [#allocation3], 1 }
  0xb6   :  { %244 = vsyncpa [#allocation3 + $0x1], 1 }

</bundles_post_ra>
